<compile_context>
chip_gen: v5e
topology: v5e:2x2
jax: 0.10.0
libtpu: 0.0.40
codegen_flags: <defaults>
</compile_context>

<pallas_src>
import functools

import jax
import jax.numpy as jnp
import numpy as np
from jax.experimental import pallas as pl
from jax.experimental.pallas import tpu as pltpu

ALPHA = 1.0
GAMMA = 2.0
IGNORE_INDEX = -100


def _focal_loss_kernel(logits_ref, targets_ref, out_ref, *, alpha, gamma,
                       ignore_index):
    # logits_ref : (1, C, T) float    targets_ref: (1, 1, T) int32
    # out_ref    : (1, 1, 1, 128) f32 — per-tile partial sum (lane-dense store)
    x = logits_ref[0].astype(jnp.float32)                      # (C, T)
    tgt = targets_ref[0]                                       # (1, T) int32
    n_cls, t_cols = x.shape

    # Padded columns carry ignore_index targets and zero logits, so the only
    # mask needed is the ignore_index one (no ragged-tile column mask).
    valid = tgt != ignore_index                                # (1, T)

    # --- softmax pieces over the class (sublane) axis ----------------------
    cmax = jnp.max(x, axis=0, keepdims=True)                   # (1, T)
    shifted = x - cmax                                         # (C, T)
    sumexp = jnp.sum(jnp.exp(shifted), axis=0, keepdims=True)  # (1, T)

    # Gather the target-class entry via a single one-hot select (no gather).
    class_ids = jax.lax.broadcasted_iota(jnp.int32, (n_cls, t_cols), 0)
    onehot = class_ids == tgt                                  # (C, T) bool
    shifted_t = jnp.sum(jnp.where(onehot, shifted, 0.0), axis=0, keepdims=True)

    # Cross-entropy per column (0 at masked positions, like reduction='none').
    ce = jnp.where(valid, jnp.log(sumexp) - shifted_t, 0.0)    # (1, T)
    # pt = exp(-ce) on the EUP; replaces the second (C,T) one-hot VALU reduce.
    pt = jnp.exp(-ce)                                          # (1, T)
    d = 1.0 - pt
    if gamma == 2.0:        # static: explicit square instead of float pow
        mod = d * d
    elif gamma == 1.0:
        mod = d
    elif gamma == 0.0:
        mod = jnp.ones_like(d)
    else:
        mod = jnp.power(d, gamma)
    # At invalid positions ce == 0 -> pt == 1 -> mod == 0 -> contribution 0,
    # so no extra select is needed here.
    focal = (alpha * ce) * mod                                 # (1, T)

    out_ref[...] = jnp.broadcast_to(jnp.sum(focal), out_ref.shape)


def _vmem_budgets():
    """(per-tile working-set budget, vmem_limit_bytes) sized per generation."""
    try:
        cap = int(pltpu.get_tpu_info().vmem_capacity_bytes)
    except Exception:
        cap = 64 << 20          # conservative: v7x per-TensorCore VMEM
    tile_budget = min(cap // 2, 48 << 20)       # v7x -> 32 MiB, v5e/v6e -> 48 MiB
    vmem_limit = min((cap * 3) // 4, 96 << 20)  # v7x -> 48 MiB, v5e/v6e -> 96 MiB
    return tile_budget, vmem_limit


def _choose_tile(n_cls, l128, g, budget_bytes):
    """Lane-tile width: multiple of 128, sized against the VMEM budget.

    Working-set model per lane column (f32): 2x double-buffered inputs
    (c_pad + 1 words) plus ~6 live (C, T) temporaries -> 4*(8*c_pad + 2) bytes.
    """
    c_pad = ((n_cls + 7) // 8) * 8
    bytes_per_lane = 4 * (8 * c_pad + 2)
    t_vmem = max(128, (budget_bytes // bytes_per_lane) // 128 * 128)
    t_cap = 32768
    # Keep the total grid >= ~8 steps when the group axis alone is too small
    # (megacore sharding + pipelining headroom).
    if g >= 8:
        t_grid = l128
    else:
        need = (8 + g - 1) // g
        t_grid = max(128, (l128 // need) // 128 * 128)
    t = max(128, min(t_vmem, t_cap, t_grid, l128))

    # Prefer the largest tile <= t (within 2x) that exactly divides the
    # 128-padded lane extent, so the wrapper never materializes a padded
    # copy of the logits in HBM.
    n128 = l128 // 128
    lo = max(t // 256, 1)
    for cand in range(t // 128, lo - 1, -1):
        if n128 % cand == 0:
            return cand * 128
    return t


def focal_loss(inputs, targets, *, alpha=ALPHA, gamma=GAMMA,
               ignore_index=IGNORE_INDEX):
    """inputs: (B, C) or NCHW (B, C, H, W); targets: (B,) or (B, H, W)."""
    if inputs.ndim == 4:
        b, c, h, w = inputs.shape
        logits3d = inputs.reshape(b, c, h * w)      # pure reshape, no transpose
        tgt3d = targets.reshape(b, 1, h * w).astype(jnp.int32)
    elif inputs.ndim == 2:
        # TODO(synk): a row-major kernel variant (classes on lanes) would avoid
        # this wrapper-side transpose (full HBM read+write) for big-vocab (B, C).
        b, c = inputs.shape
        logits3d = jnp.transpose(inputs, (1, 0)).reshape(1, c, b)
        tgt3d = targets.reshape(1, 1, b).astype(jnp.int32)
    else:
        raise ValueError("inputs must be (B, C) or (B, C, H, W)")

    g, c, l = logits3d.shape
    n_total = g * l                 # true element count for .mean() (ignored included)

    l128 = ((l + 127) // 128) * 128
    tile_budget, vmem_limit = _vmem_budgets()
    t = _choose_tile(c, l128, g, tile_budget)

    # Pad the lane axis to a multiple of T (targets with ignore_index so padded
    # columns contribute exactly zero and no in-kernel column mask is needed).
    l_pad = ((l + t - 1) // t) * t
    if l_pad != l:
        logits3d = jnp.pad(logits3d, ((0, 0), (0, 0), (0, l_pad - l)))
        tgt3d = jnp.pad(tgt3d, ((0, 0), (0, 0), (0, l_pad - l)),
                        constant_values=ignore_index)
    n_t = l_pad // t

    kernel = functools.partial(
        _focal_loss_kernel, alpha=float(alpha), gamma=float(gamma),
        ignore_index=int(ignore_index))

    partials = pl.pallas_call(
        kernel,
        out_shape=jax.ShapeDtypeStruct((g, n_t, 1, 128), jnp.float32),
        grid=(g, n_t),
        in_specs=[
            pl.BlockSpec((1, c, t), lambda gi, ti: (gi, 0, ti)),
            pl.BlockSpec((1, 1, t), lambda gi, ti: (gi, 0, ti)),
        ],
        out_specs=pl.BlockSpec((1, 1, 1, 128), lambda gi, ti: (gi, ti, 0, 0)),
        compiler_params=pltpu.CompilerParams(
            dimension_semantics=("parallel", "parallel"),
            vmem_limit_bytes=int(vmem_limit)),
    )(logits3d, tgt3d)

    # Single reduction + single multiply by 1/M (true M, ignored included).
    return jnp.sum(partials[..., 0, 0]) * (1.0 / n_total)


def _focal_loss_ref(inputs, targets, *, alpha=ALPHA, gamma=GAMMA,
                    ignore_index=IGNORE_INDEX):
    """Pure-JAX reference matching F.cross_entropy(reduction='none') + focal."""
    b, c, h, w = inputs.shape
    logits = jnp.transpose(inputs, (0, 2, 3, 1)).reshape(-1, c)
    tgt = targets.reshape(-1).astype(jnp.int32)
    logp = jax.nn.log_softmax(logits.astype(jnp.float32), axis=-1)
    valid = tgt != ignore_index
    safe_tgt = jnp.where(valid, tgt, 0)
    ce = -jnp.take_along_axis(logp, safe_tgt[:, None], axis=-1)[:, 0]
    ce = jnp.where(valid, ce, 0.0)
    pt = jnp.exp(-ce)
    fl = alpha * (1.0 - pt) ** gamma * ce
    fl = jnp.where(valid, fl, 0.0)
    return jnp.mean(fl)


if __name__ == "__main__":
    key = jax.random.PRNGKey(0)
    k1, k2, k3, k4, k5, k6 = jax.random.split(key, 6)

    # Main check: small NCHW segmentation-style shapes.
    B, C, H, W = 2, 4, 16, 16
    x = jax.random.normal(k1, (B, C, H, W), dtype=jnp.float32)
    t = jax.random.randint(k2, (B, H, W), 0, C, dtype=jnp.int32)
    ignore_mask = jax.random.bernoulli(k3, 0.1, (B, H, W))
    t = jnp.where(ignore_mask, jnp.int32(IGNORE_INDEX), t)

    loss = focal_loss(x, t)
    jax.block_until_ready(loss)
    ref = _focal_loss_ref(x, t)
    jax.block_until_ready(ref)
    assert np.allclose(np.asarray(loss), np.asarray(ref), rtol=1e-5, atol=1e-6), (
        float(loss), float(ref))

    # Secondary check: ragged spatial size (exercises lane padding with
    # ignore_index targets).
    B2, C2, H2, W2 = 2, 4, 13, 13
    x2 = jax.random.normal(k4, (B2, C2, H2, W2), dtype=jnp.float32)
    t2 = jax.random.randint(k5, (B2, H2, W2), 0, C2, dtype=jnp.int32)
    ignore_mask2 = jax.random.bernoulli(k6, 0.1, (B2, H2, W2))
    t2 = jnp.where(ignore_mask2, jnp.int32(IGNORE_INDEX), t2)

    loss2 = focal_loss(x2, t2)
    jax.block_until_ready(loss2)
    ref2 = _focal_loss_ref(x2, t2)
    jax.block_until_ready(ref2)
    assert np.allclose(np.asarray(loss2), np.asarray(ref2), rtol=1e-5, atol=1e-6), (
        float(loss2), float(ref2))

    print("KERNEL_OK")
</pallas_src>

<mosaic_0001>
module attributes {stable_mosaic.version = 11 : i64} {
  func.func @_focal_loss_kernel(%arg0: i32, %arg1: i32, %arg2: memref<1x4x128xf32, #tpu.memory_space<vmem>>, %arg3: memref<1x1x128xi32, #tpu.memory_space<vmem>>, %arg4: memref<1x1x1x128xf32, #tpu.memory_space<vmem>>) attributes {dimension_semantics = [#tpu.dimension_semantics<parallel>, #tpu.dimension_semantics<parallel>], iteration_bounds = array<i64: 2, 2>, scalar_prefetch = 0 : i64, scratch_operands = 0 : i64, tpu.core_type = #tpu.core_type<tc>, window_params = [{transform_indices = @transform_0, window_bounds = array<i64: 1, 4, 128>}, {transform_indices = @transform_1, window_bounds = array<i64: 1, 1, 128>}, {transform_indices = @transform_2, window_bounds = array<i64: 1, 1, 1, 128>}]} {
    %c0 = arith.constant 0 : index
    %c0_0 = arith.constant 0 : index
    %c0_1 = arith.constant 0 : index
    %0 = vector.load %arg2[%c0, %c0_0, %c0_1] : memref<1x4x128xf32, #tpu.memory_space<vmem>>, vector<1x4x128xf32>
    %1 = vector.shape_cast %0 : vector<1x4x128xf32> to vector<4x128xf32>
    %c0_2 = arith.constant 0 : index
    %c0_3 = arith.constant 0 : index
    %c0_4 = arith.constant 0 : index
    %2 = vector.load %arg3[%c0_2, %c0_3, %c0_4] : memref<1x1x128xi32, #tpu.memory_space<vmem>>, vector<1x1x128xi32>
    %3 = vector.shape_cast %2 : vector<1x1x128xi32> to vector<1x128xi32>
    %c-100_i32 = arith.constant -100 : i32
    %4 = vector.broadcast %c-100_i32 : i32 to vector<1x128xi32>
    %5 = arith.cmpi ne, %3, %4 : vector<1x128xi32>
    %cst = arith.constant dense<0xFF800000> : vector<128xf32>
    %6 = vector.multi_reduction <maximumf>, %1, %cst [0] : vector<4x128xf32> to vector<128xf32>
    %7 = vector.shape_cast %6 : vector<128xf32> to vector<1x128xf32>
    %8 = vector.broadcast %7 : vector<1x128xf32> to vector<4x128xf32>
    %9 = arith.subf %1, %8 : vector<4x128xf32>
    %10 = math.exp %9 : vector<4x128xf32>
    %cst_5 = arith.constant dense<0.000000e+00> : vector<128xf32>
    %11 = vector.multi_reduction <add>, %10, %cst_5 [0] : vector<4x128xf32> to vector<128xf32>
    %12 = vector.shape_cast %11 : vector<128xf32> to vector<1x128xf32>
    %13 = tpu.iota {dimensions = array<i32: 0>} : vector<4x128xi32>
    %14 = vector.broadcast %3 : vector<1x128xi32> to vector<4x128xi32>
    %15 = arith.cmpi eq, %13, %14 : vector<4x128xi32>
    %cst_6 = arith.constant 0.000000e+00 : f32
    %16 = vector.broadcast %cst_6 : f32 to vector<4x128xf32>
    %17 = arith.select %15, %9, %16 : vector<4x128xi1>, vector<4x128xf32>
    %cst_7 = arith.constant dense<0.000000e+00> : vector<128xf32>
    %18 = vector.multi_reduction <add>, %17, %cst_7 [0] : vector<4x128xf32> to vector<128xf32>
    %19 = vector.shape_cast %18 : vector<128xf32> to vector<1x128xf32>
    %20 = math.log %12 : vector<1x128xf32>
    %21 = arith.subf %20, %19 : vector<1x128xf32>
    %cst_8 = arith.constant 0.000000e+00 : f32
    %22 = vector.broadcast %cst_8 : f32 to vector<1x128xf32>
    %23 = arith.select %5, %21, %22 : vector<1x128xi1>, vector<1x128xf32>
    %cst_9 = arith.constant 0.000000e+00 : f32
    %24 = vector.broadcast %cst_9 : f32 to vector<1x128xf32>
    %25 = arith.subf %24, %23 : vector<1x128xf32>
    %26 = math.exp %25 : vector<1x128xf32>
    %cst_10 = arith.constant 1.000000e+00 : f32
    %27 = vector.broadcast %cst_10 : f32 to vector<1x128xf32>
    %28 = arith.subf %27, %26 : vector<1x128xf32>
    %29 = arith.mulf %28, %28 : vector<1x128xf32>
    %cst_11 = arith.constant 1.000000e+00 : f32
    %30 = vector.broadcast %cst_11 : f32 to vector<1x128xf32>
    %31 = arith.mulf %30, %23 : vector<1x128xf32>
    %32 = arith.mulf %31, %29 : vector<1x128xf32>
    %33 = vector.shape_cast %32 : vector<1x128xf32> to vector<1x1x128xf32>
    %cst_12 = arith.constant dense<0.000000e+00> : vector<1xf32>
    %34 = vector.multi_reduction <add>, %33, %cst_12 [1, 2] : vector<1x1x128xf32> to vector<1xf32>
    %35 = vector.shape_cast %34 : vector<1xf32> to vector<1x1x1xf32>
    %36 = vector.extract %35[0, 0, 0] : f32 from vector<1x1x1xf32>
    %37 = vector.broadcast %36 : f32 to vector<1x1x1x128xf32>
    %c0_13 = arith.constant 0 : index
    %c0_14 = arith.constant 0 : index
    %c0_15 = arith.constant 0 : index
    %c0_16 = arith.constant 0 : index
    %38 = vector.load %arg4[%c0_13, %c0_14, %c0_15, %c0_16] : memref<1x1x1x128xf32, #tpu.memory_space<vmem>>, vector<1x1x1x128xf32>
    tpu.vector_store %arg4[%c0_13, %c0_14, %c0_15, %c0_16], %37 {strides = array<i32>} : memref<1x1x1x128xf32, #tpu.memory_space<vmem>>, vector<1x1x1x128xf32>,
    return
  }
  func.func @transform_0(%arg0: i32, %arg1: i32) -> (i32, i32, i32) {
    %c0_i32 = arith.constant 0 : i32
    %c0_i32_0 = arith.constant 0 : i32
    return %arg0, %c0_i32, %arg1 : i32, i32, i32
  }
  func.func @transform_1(%arg0: i32, %arg1: i32) -> (i32, i32, i32) {
    %c0_i32 = arith.constant 0 : i32
    %c0_i32_0 = arith.constant 0 : i32
    return %arg0, %c0_i32, %arg1 : i32, i32, i32
  }
  func.func @transform_2(%arg0: i32, %arg1: i32) -> (i32, i32, i32, i32) {
    %c0_i32 = arith.constant 0 : i32
    %c0_i32_0 = arith.constant 0 : i32
    %c0_i32_1 = arith.constant 0 : i32
    return %arg0, %arg1, %c0_i32, %c0_i32_0 : i32, i32, i32, i32
  }
}

</mosaic_0001>

<bundles_post_ra>
// kernel: tpu_custom_call.1
= control target key start
LH: loop header
LB: loop body
LE: loop exit
PB: predicated region body
PF: predicated region fallthrough
CT: control target
= control target key end

     0   :  { %7 = vsyncpa [#allocation3], 0  ;;  %s841_s0 = inlined_call_operand.hbm [shape: f32[2,4,256], index: 0, kind: input, shape index: {}]   ;;  %s842_s1 = inlined_call_operand.hbm [shape: s32[2,1,256], index: 1, kind: input, shape index: {}]   ;;  %s843_s2 = inlined_call_operand.hbm [shape: f32[2,2,1,128], index: 2, kind: output, shape index: {}]  }
   0x1   :  { %9 = vsyncpa [#allocation3 + $0x1], 0 }
   0x2   :  { %10 = vsyncpa [#allocation6], 0 }
   0x3   :  { %12 = vsyncpa [#allocation6 + $0x1], 0 }
   0x4   :  { %13 = vsyncpa [#allocation4], 0 }
   0x5   :  { %15 = vsyncpa [#allocation4 + $0x1], 0  ;;  %s674_s9 = smov 0   ;;  %s676_s10 = smov 0  }
   0x6   :  { %s678_s11 = smov 0   ;;  %s680_s12 = smov 0  }
   0x7   :  { %s682_s13 = smov 0   ;;  %s684_s14 = smov 0  }
   0x8   :  { %s686_s15 = smov 0   ;;  %s688_s16 = smov 0  }
   0x9 LB: > { %s390_s17 = sadd.s32 4294967295, %s657_s16   ;;  %s391_s18 = sadd.s32 4294967294, %s657_s16   ;;  %s657_s16 = sphi %s688_s16, %s21_s16   ;;  %s653_s15 = sphi %s686_s15, %s855_s15   ;;  %s649_s14 = sphi %s684_s14, %s854_s14   ;;  %s645_s13 = sphi %s682_s13, %s853_s13   ;;  %s641_s12 = sphi %s680_s12, %s852_s12   ;;  %s637_s11 = sphi %s678_s11, %s851_s11   ;;  %s633_s10 = sphi %s676_s10, %s850_s10   ;;  %s629_s9 = sphi %s674_s9, %s849_s9  }
   0xa   : > { %s30_s19 = sadd.s32 1, %s649_s14  ;;  %s33_s20 = sadd.s32 1, %s653_s15 }
   0xb   : > { %p31_p0 = scmp.ge.s32.totalorder %s30_s19, 2  ;;  %s42_s21 = sadd.s32 1, %s637_s11 }
   0xc   : > { %p49_p1 = scmp.ne.s32.totalorder %s637_s11, %s633_s10  ;;  %p50_p2 = scmp.eq.s32.totalorder %s657_s16, 0 }
   0xd   : > { %s857_s19 = smov (%p31_p0, %s30_s19), 0  ;;  %s859_s20 = smov (!%p31_p0, %s33_s20), %s653_s15 }
   0xe   : > { %s38_s22 = ssub.s32 %s649_s14, %s857_s19  ;;  %p727_p3 = por %p50_p2, %p49_p1 }
   0xf   : > { %p35_p4 = scmp.ge.s32.totalorder %s859_s20, 2  ;;  %p55_p5 = scmp.ne.s32.totalorder %s633_s10, %s629_s9 }
  0x10   : > { %p56_p6 = scmp.eq.s32.totalorder %s390_s17, 0  ;;  %p109_p7 = scmp.eq.s32.totalorder %s390_s17, 3 }
  0x11   : > { %s861_s20 = smov (%p35_p4, %s859_s20), 0  ;;  %p115_p10 = scmp.eq.s32.totalorder %s391_s18, 3 }
  0x12   : > { %p735_p8 = por %p56_p6, %p55_p5  ;;  %p739_p9 = por %p109_p7, %p49_p1 }
  0x13   : > { %s37_s26 = ssub.s32 %s653_s15, %s861_s20  ;;  %p745_p12 = por %p115_p10, %p55_p5 }
  0x14   : > { %s39_s27 = sor.u32 %s38_s22, %s37_s26  ;;  %p422_p13 = scmp.lt.s32.totalorder %s657_s16, 4 }
  0x15   : > { %p40_p11 = scmp.eq.s32.totalorder %s39_s27, 0  ;;  %s135_s29 = sand.u32 1, %s637_s11  }
  0x16   : > { %s394_s3 = sshll.u32 %s135_s29, 2  ;;  %s395_s4 = sshll.u32 %s653_s15, 1 }
  0x17   : > { %s752_s30 = scalar_select %p40_p11, %s637_s11, %s42_s21  }
  0x18   : > { %s143_s5 = sadd.s32 %s649_s14, %s395_s4  ;;  %s139_s6 = scalar_lea.vmem [#allocation2], %s394_s3 }
  0x19   : > { %s149_s7 = sshll.u32 %s139_s6, 4  ;;  %s396_s8 = sshll.u32 %s143_s5, 2  ;;  %s150_s7 = int_to_ptr.vmem [resolvable:$true] %s149_s7 }
  0x1a   : > { %s145_s22 = scalar_lea.hbm %s841_s0, %s396_s8  ;;  %p761_p0 = pnand %p422_p13, %p727_p3 }
  0x1b   : > { %s147_s21 = sshll.u32 %s145_s22, 4  ;;  %p398_p1 = scmp.ge.s32.totalorder %s657_s16, 1  ;;  %s148_s21 = int_to_ptr.hbm [resolvable:$true] %s147_s21 }
  0x1c   : > { %s136_s27 = scalar_lea.sflag [#allocation3], %s135_s29  ;;  %p173_p2 = scmp.lt.s32.totalorder %s657_s16, 5 }
  0x1d   : > { %414 = dma.hbm_to_vmem [thread:$0]  (!%p761_p0), %s148_s21, 64, %s150_s7, %s136_s27  }
  0x1e   : > { %s164_s6 = scalar_lea.hbm %s842_s1, %s143_s5  ;;  %p174_p4 = pnand %p398_p1, %p173_p2 }
  0x1f   : > { %s166_s8 = sshll.u32 %s164_s6, 4  ;;  %s159_s23 = scalar_lea.vmem [#allocation5], %s135_s29  ;;  %s167_s8 = int_to_ptr.hbm [resolvable:$true] %s166_s8 }
  0x20   : > { %s168_s17 = sshll.u32 %s159_s23, 4  ;;  %s157_s18 = scalar_lea.sflag [#allocation6], %s135_s29  ;;  %s169_s17 = int_to_ptr.vmem [resolvable:$true] %s168_s17 }
  0x21   : > { %417 = dma.hbm_to_vmem [thread:$0]  (!%p761_p0), %s167_s8, 16, %s169_s17, %s157_s18  }
  0x22   : > { %177 = sbr.rel (%p174_p4) target bundleno = 292 (0x124), region = 28  ;;  %s775_s22 = sand.u32 (!%p174_p4), 1, %s633_s10  }
  0x23   : > { %s399_s7 = sshll.u32 (!%p174_p4), %s775_s22, 2  ;;  %s180_s21 = scalar_lea.sflag (!%p174_p4), [#allocation3], %s775_s22 }
  0x24   : > { %s183_s27 = scalar_lea.vmem (!%p174_p4), [#allocation2], %s399_s7 }
  0x27   : > { %616 = dma.done.wait (%p735_p8), %s180_s21, 64  }
  0x28   : > { %618 = vsyncadd (%p735_p8), %s180_s21, 4294967232  ;;  %s190_s29 = scalar_lea.sflag [#allocation6], %s775_s22  ;;  %s192_s5 = scalar_lea.vmem [#allocation5], %s775_s22 }
  0x29   : > { %620 = dma.done.wait (%p735_p8), %s190_s29, 16  }
  0x2a   : > { %622 = vsyncadd (%p735_p8), %s190_s29, 4294967280  ;;  %vm220_vm0 = vcmask 1043456   ;;  %v217_v0 = vld [vmem:[%s183_s27] sm:$0xf]  ;;  %v238_v5 = vlaneseq  ;;  %vm260_vm3 = vcmask 1040384   ;;  %s400_s24 = sshll.u32 %s645_s13, 1 }
  0x2b   : > { %v221_v1 = vsel %vm220_vm0, %v217_v0, -inf  ;;  %v488_v9 = vld [vmem:[%s192_s5] ss:$0 sm:$0xff]  ;;  %s283_s26 = sadd.s32 %s641_s12, %s400_s24  ;;  %s216_s8 = scalar_lea.vmem [#allocation7], %s775_s22 }
  0x2c   : > { %v222_v2 = vrot.slane %v221_v1, 4  ;;  %v239_v8 = vshrl.u32 %v238_v5, 7  ;;  %v218_v28 = vld [vmem:[%s192_s5] sm:$0x1]  ;;  %s284_s6 = scalar_lea.hbm %s843_s2, %s283_s26  ;;  %s286_s23 = sshll.u32 %s216_s8, 4  ;;  %s287_s23 = int_to_ptr.vmem [resolvable:$true] %s286_s23 }
  0x2d   : > { %vm219_vm2 = vcmp.ne.s32.totalorder %v218_v28, 4294967196  ;;  %s288_s17 = sshll.u32 %s284_s6, 4  ;;  %s274_s7 = scalar_lea.sflag [#allocation4], %s775_s22  ;;  %s289_s17 = int_to_ptr.hbm [resolvable:$true] %s288_s17 }
  0x2e   : > { %v223_v3 = vmax.f32 %v221_v1, %v222_v2  ;;  %vm241_vm1 = vcmp.eq.s32.totalorder %v239_v8, %v488_v9  ;;  %s569_s21 = sshra.s32 %s289_s17, 4  ;;  %s575_s29 = scalar_lea.hbm %s843_s2, 4  ;;  %s570_s21 = int_to_ptr.hbm [resolvable:$true] %s569_s21 }
  0x2f   : > { %s571_s27 = scalar_lea.hbm %s570_s21, 1  ;;  %p576_p7 = scmp.lt.s32.totalorder %s570_s21, %s843_s2 }
  0x30   : > { %v224_v4 = vrot.slane %v223_v3, 2  ;;  %p572_p3 = scmp.ne.s32.totalorder %s570_s21, %s571_s27  ;;  %p577_p8 = scmp.lt.s32.totalorder %s575_s29, %s571_s27 }
  0x32   : > { %v225_v6 = vmax.f32 %v223_v3, %v224_v4  ;;  %p573_p5 = pnand %p572_p3, %p739_p9  ;;  %p578_p10 = por %p577_p8, %p576_p7 }
  0x34   : > { %v226_v7 = vrot.slane %v225_v6, 1  ;;  %p574_p6 = pneg %p573_p5 }
  0x36   : > { %v227_v10 = vmax.f32 %v225_v6, %v226_v7  ;;  %p579_p11 = pnand %p578_p10, %p574_p6 }
  0x38   : > { %v228_v11 = vsub.f32 %v217_v0, %v227_v10 }
  0x3a   : > { %v229_v12 = vmul.f32 1.442695, %v228_v11  ;;  %v242_v13 = vsel %vm241_vm1, %v228_v11, 0.0 }
  0x3b   : > { %v243_v14 = vsel %vm220_vm0, %v242_v13, 0.0 }
  0x3c   : > { %489 = vpow2.f32 %v229_v12  ;;  %v244_v15 = vrot.slane %v243_v14, 4 }
  0x3e   : > { %v245_v19 = vadd.f32 %v244_v15, %v243_v14 }
  0x40   : > { %v246_v22 = vrot.slane %v245_v19, 2 }
  0x42   : > { %v490_v16 = vpop.eup %489  ;;  %v247_v25 = vadd.f32 %v246_v22, %v245_v19 }
  0x43   : > { %v231_v17 = vsel %vm220_vm0, %v490_v16, 0.0 }
  0x44   : > { %v232_v18 = vrot.slane %v231_v17, 4  ;;  %v248_v27 = vrot.slane %v247_v25, 1 }
  0x46   : > { %v233_v20 = vadd.f32 %v232_v18, %v231_v17  ;;  %v249_v29 = vadd.f32 %v248_v27, %v247_v25 }
  0x48   : > { %v234_v21 = vrot.slane %v233_v20, 2 }
  0x4a   : > { %v235_v23 = vadd.f32 %v234_v21, %v233_v20 }
  0x4c   : > { %v236_v24 = vrot.slane %v235_v23, 1 }
  0x4e   : > { %v237_v26 = vadd.f32 %v236_v24, %v235_v23 }
  0x50   : > { %491 = vlog2.f32 %v237_v26 }
  0x56   : > { %v492_v30 = vpop.eup %491 }
  0x57   : > { %v251_v31 = vmul.f32 0.6931472, %v492_v30 }
  0x59   : > { %v252_v32 = vsub.f32 %v251_v31, %v249_v29 }
  0x5b   : > { %v253_v33 = vsel %vm219_vm2, %v252_v32, 0.0 }
  0x5c   : > { %v254_v34 = vsub.f32 0.0, %v253_v33 }
  0x5e   : > { %v255_v35 = vmul.f32 1.442695, %v254_v34 }
  0x60   : > { %493 = vpow2.f32 %v255_v35 }
  0x66   : > { %v494_v36 = vpop.eup %493 }
  0x67   : > { %v257_v37 = vsub.f32 1.0, %v494_v36 }
  0x69   : > { %v258_v38 = vmul.f32 %v257_v37, %v257_v37 }
  0x6b   : > { %v259_v39 = vmul.f32 %v258_v38, %v253_v33 }
  0x6d   : > { %v261_v40 = vsel %vm260_vm3, %v259_v39, 0.0 }
  0x6e   : > { %262 = vadd.xlane.f32.xlu0 %v261_v40 }
  0xe1   : > { %v263_v41 = vpop.xlane.xlu0 %262 }
  0xe2   : > { %v264_v42 = vrot.slane %v263_v41, 4 }
  0xe4   : > { %v265_v43 = vadd.f32 %v264_v42, %v263_v41 }
  0xe6   : > { %v266_v44 = vrot.slane %v265_v43, 2 }
  0xe8   : > { %v267_v45 = vadd.f32 %v266_v44, %v265_v43 }
  0xea   : > { %v268_v46 = vrot.slane %v267_v45, 1 }
  0xec   : > { %v269_v47 = vadd.f32 %v268_v46, %v267_v45 }
  0xee   : > { %403 = vpush %v269_v47 }
 0x11f   : > { %s404_s18 = spop %403 }
 0x120   : > { %v271_v48 = vstv %s404_s18 }
 0x121   : > { %272 = vst [vmem:[%s216_s8] sm:$0x1] %v271_v48 }
 0x122   : > { %582 = shalt.err (!%p579_p11)
}
 0x123   : > { %409 = dma.vmem_to_hbm [thread:$0]  (%p739_p9), %s287_s23, 16, %s289_s17, %s274_s7  }
 0x124 PF: > { %p423_p13 = scmp.ge.s32.totalorder %s657_s16, 2  ;;  %s300_s22 = sand.u32 1, %s629_s9  }
 0x125   : > { %s301_s26 = scalar_lea.sflag [#allocation4], %s300_s22 }
 0x126   : > { %p419_p0 = pnand %p423_p13, %p745_p12 }
 0x128   : > { %p420_p1 = pneg %p419_p0 }
 0x12a   : > { %624 = dma.done.wait (%p420_p1), %s301_s26, 16  }
 0x12b   : > { %626 = vsyncadd (%p420_p1), %s301_s26, 4294967280  ;;  %s21_s16 = sadd.s32 1, %s657_s16   ;;  %s849_s9 = smov %s633_s10 }
 0x12c   : > { %p18_p2 = scmp.ge.s32.totalorder %s21_s16, 6   ;;  %s850_s10 = smov %s637_s11 }
 0x12d   : > { %s851_s11 = smov %s752_s30  ;;  %s852_s12 = smov %s649_s14 }
 0x12e   : > { %s853_s13 = smov %s653_s15  ;;  %s854_s14 = smov %s857_s19 }
 0x12f   : > { %s855_s15 = smov %s861_s20  ;;  %20 = sbr.rel (!%p18_p2) target bundleno = 9 (0x9), region = 86 }
 0x134   :  { %306 = vsyncpa [#allocation3], 1 }
 0x135   :  { %308 = vsyncpa [#allocation3 + $0x1], 1 }
 0x136   :  { %309 = vsyncpa [#allocation6], 1 }
 0x137   :  { %311 = vsyncpa [#allocation6 + $0x1], 1 }
 0x138   :  { %312 = vsyncpa [#allocation4], 1 }
 0x139   :  { %314 = vsyncpa [#allocation4 + $0x1], 1 }

</bundles_post_ra>
